<compile_context>
chip_gen: v7x
topology: tpu7x:2x2x1
jax: 0.10.0
libtpu: 0.0.40
codegen_flags: <defaults>
</compile_context>

<pallas_src>
import functools

import jax
import jax.numpy as jnp
import numpy as np
from jax.experimental import pallas as pl
from jax.experimental.pallas import tpu as pltpu


def _tap_masks(H, W, n_img, dtype):
    """(9, n_img*H*W) 0/1 border masks for the 9 conv taps, tiled per image.

    Row tap=kh*3+kw is 1 wherever the shifted source pixel (h+kh-1, w+kw-1)
    lies inside its image (i.e. the implicit zero padding of padding=1 did
    NOT apply), else 0.  Because the mask is tiled per image along the lane
    axis, it also zeroes any roll leakage across image boundaries / wraps.
    """
    hw = H * W
    r = np.arange(hw) // W
    c = np.arange(hw) % W
    rows = []
    for kh in range(3):
        for kw in range(3):
            sh, sw = kh - 1, kw - 1
            valid = (r + sh >= 0) & (r + sh < H) & (c + sw >= 0) & (c + sw < W)
            rows.append(valid.astype(np.float32))
    m = np.stack(rows, axis=0)            # (9, H*W)
    m = np.tile(m, (1, n_img))            # (9, n_img*H*W), per-image tiled
    return jnp.asarray(m, dtype=dtype)


def _make_conv_relu_kernel(H, W, n_img, cin_pad, matmul_dtype):
    hw = H * W
    lanes = n_img * hw

    def kernel(x_ref, w_ref, b_ref, m_ref, o_ref):
        # x_ref: (n_img, cin_pad, H*W)   per-image flattened NCHW slabs
        # w_ref: (Cout, 9*cin_pad)       im2col-ordered weights [co,(kh,kw,ci)]
        # b_ref: (Cout, 1)               bias (f32)
        # m_ref: (9, n_img*H*W)          per-tap 0/1 border masks
        # o_ref: (n_img, Cout, H*W)      lane-dense output
        if n_img == 1:
            x = x_ref[0]
        else:
            # Fold the batch into the lane axis: lane-aligned VMEM concat
            # (hw is a multiple of 128 at these shapes), no HBM transpose.
            x = jnp.concatenate([x_ref[n] for n in range(n_img)], axis=1)

        # im2col patch matrix: each tap is an XLU lane-rotate of the folded
        # image plus a sublane-broadcast border mask (recreates padding=1 and
        # zeroes cross-image / wrap-around leakage).  Centre tap is free.
        taps = []
        for kh in range(3):
            for kw in range(3):
                delta = (kh - 1) * W + (kw - 1)      # flat-index offset of tap
                if delta == 0:
                    taps.append(x)                   # centre tap: mask == 1
                else:
                    t = pltpu.roll(x, shift=(-delta) % lanes, axis=1)
                    m = m_ref[pl.ds(3 * kh + kw, 1), :]   # (1, lanes)
                    taps.append(t * m)
        patches = jnp.concatenate(taps, axis=0)      # (9*cin_pad, lanes)

        w = w_ref[...]
        if matmul_dtype is not None:
            # v5e-style late cast: prep in f32, feed the MXU in bf16.
            w = w.astype(matmul_dtype)
            patches = patches.astype(matmul_dtype)

        # One deep MXU matmul with f32 accumulation, then bias + ReLU,
        # stored to lane-dense (Cout, H*W) slabs.
        acc = jnp.dot(w, patches, preferred_element_type=jnp.float32)
        acc = jnp.maximum(acc + b_ref[...], 0.0)     # (Cout, lanes), f32
        acc = acc.astype(o_ref.dtype)
        for n in range(n_img):                       # lane-aligned stores
            o_ref[n, :, :] = acc[:, n * hw:(n + 1) * hw]

    return kernel


@functools.partial(
    jax.jit,
    static_argnames=("compute_dtype", "matmul_dtype", "images_per_block"))
def conv_relu(x_nchw, weight_oihw, bias, *, compute_dtype=None,
              matmul_dtype=None, images_per_block=None):
    """ConvRelu forward: (N, Cin, H, W) -> (N, Cout, H, W), k=3, pad=1, bias."""
    N, Cin, H, W = x_nchw.shape
    Cout = weight_oihw.shape[0]
    hw = H * W

    ipb = N if images_per_block is None else images_per_block
    assert N % ipb == 0, "images_per_block must divide N"
    num_blocks = N // ipb

    in_dtype = jnp.dtype(x_nchw.dtype if compute_dtype is None else compute_dtype)
    pack = 16 if in_dtype.itemsize == 2 else 8       # sublane pack (bf16:16, f32:8)
    cin_pad = ((Cin + pack - 1) // pack) * pack

    # Wrapper glue: zero-pad channels to the sublane pack + reshape only
    # (no transpose HBM passes; the N -> lane fold happens inside the kernel).
    x = x_nchw
    w_k = jnp.transpose(weight_oihw, (0, 2, 3, 1))   # (Cout, kh, kw, Cin)
    if cin_pad != Cin:
        x = jnp.pad(x, ((0, 0), (0, cin_pad - Cin), (0, 0), (0, 0)))
        w_k = jnp.pad(w_k, ((0, 0), (0, 0), (0, 0), (0, cin_pad - Cin)))
    x = x.reshape(N, cin_pad, hw).astype(in_dtype)
    w_mat = w_k.reshape(Cout, 9 * cin_pad).astype(in_dtype)
    b_col = bias.reshape(Cout, 1).astype(jnp.float32)
    masks = _tap_masks(H, W, ipb, in_dtype)          # (9, ipb*H*W)

    out = pl.pallas_call(
        _make_conv_relu_kernel(H, W, ipb, cin_pad, matmul_dtype),
        out_shape=jax.ShapeDtypeStruct((N, Cout, hw), x_nchw.dtype),
        grid_spec=pltpu.PrefetchScalarGridSpec(
            num_scalar_prefetch=0,
            grid=(num_blocks,),                      # default: single step
            in_specs=[
                pl.BlockSpec((ipb, cin_pad, hw), lambda n: (n, 0, 0)),
                pl.BlockSpec((Cout, 9 * cin_pad), lambda n: (0, 0)),
                pl.BlockSpec((Cout, 1), lambda n: (0, 0)),
                pl.BlockSpec((9, ipb * hw), lambda n: (0, 0)),
            ],
            out_specs=pl.BlockSpec((ipb, Cout, hw), lambda n: (n, 0, 0)),
        ),
        compiler_params=pltpu.CompilerParams(
            dimension_semantics=("parallel",),       # batch groups across TCs
        ),
    )(x, w_mat, b_col, masks)

    return out.reshape(N, Cout, H, W)                # pure reshape back to NCHW


if __name__ == "__main__":
    key = jax.random.PRNGKey(0)
    k_x, k_w, k_b = jax.random.split(key, 3)

    N, Cin, Cout, H, W = 2, 4, 8, 16, 16

    x = jax.random.normal(k_x, (N, Cin, H, W), dtype=jnp.float32)
    # Deterministic synthetic params (Conv2d(in_=4, out=8, k=3) shapes).
    fan_in = Cin * 3 * 3
    bound = 1.0 / (fan_in ** 0.5)
    weight = jax.random.uniform(
        k_w, (Cout, Cin, 3, 3), dtype=jnp.float32, minval=-bound, maxval=bound)
    bias = jax.random.uniform(
        k_b, (Cout,), dtype=jnp.float32, minval=-bound, maxval=bound)

    # Reference: XLA conv (same semantics as nn.Conv2d(pad=1) + ReLU).
    ref = jax.lax.conv_general_dilated(
        x, weight, window_strides=(1, 1), padding=((1, 1), (1, 1)),
        dimension_numbers=("NCHW", "OIHW", "NCHW"),
    ) + bias[None, :, None, None]
    ref = jnp.maximum(ref, 0.0)

    # f32 path, whole batch folded into one grid step (v5e/v6e default).
    out = jax.block_until_ready(conv_relu(x, weight, bias))
    assert out.shape == (N, Cout, H, W)
    assert jnp.allclose(out, ref, atol=1e-4, rtol=1e-4)

    # bf16 boundary-cast path with f32 accumulation (v6e / v7x default).
    out_bf16 = jax.block_until_ready(
        conv_relu(x, weight, bias, compute_dtype=jnp.bfloat16))
    assert jnp.allclose(out_bf16, ref, atol=5e-2, rtol=5e-2)

    # v5e-style late cast (f32 prep, bf16 matmul) with a 2-way parallel grid
    # (one image group per TensorCore, as recommended for v7x).
    out_late = jax.block_until_ready(
        conv_relu(x, weight, bias, matmul_dtype=jnp.bfloat16, images_per_block=1))
    assert jnp.allclose(out_late, ref, atol=5e-2, rtol=5e-2)

    print("KERNEL_OK")
</pallas_src>

<mosaic_0001>
module attributes {stable_mosaic.version = 11 : i64} {
  func.func @kernel(%arg0: i32, %arg1: memref<2x8x256xf32, #tpu.memory_space<vmem>>, %arg2: memref<8x72xf32, #tpu.memory_space<vmem>>, %arg3: memref<8x1xf32, #tpu.memory_space<vmem>>, %arg4: memref<9x512xf32, #tpu.memory_space<vmem>>, %arg5: memref<2x8x256xf32, #tpu.memory_space<vmem>>) attributes {dimension_semantics = [#tpu.dimension_semantics<parallel>], iteration_bounds = array<i64: 1>, scalar_prefetch = 0 : i64, scratch_operands = 0 : i64, tpu.core_type = #tpu.core_type<tc>, window_params = [{transform_indices = @transform_0, window_bounds = array<i64: 2, 8, 256>}, {pipeline_mode = #tpu.pipeline_mode<synchronous>, transform_indices = @transform_1, window_bounds = array<i64: 8, 72>}, {pipeline_mode = #tpu.pipeline_mode<synchronous>, transform_indices = @transform_2, window_bounds = array<i64: 8, 1>}, {pipeline_mode = #tpu.pipeline_mode<synchronous>, transform_indices = @transform_3, window_bounds = array<i64: 9, 512>}, {transform_indices = @transform_4, window_bounds = array<i64: 2, 8, 256>}]} {
    %c0 = arith.constant 0 : index
    %c0_0 = arith.constant 0 : index
    %c0_1 = arith.constant 0 : index
    %0 = vector.load %arg1[%c0, %c0_0, %c0_1] : memref<2x8x256xf32, #tpu.memory_space<vmem>>, vector<1x8x256xf32>
    %1 = vector.shape_cast %0 : vector<1x8x256xf32> to vector<8x256xf32>
    %c1 = arith.constant 1 : index
    %c0_2 = arith.constant 0 : index
    %c0_3 = arith.constant 0 : index
    %2 = vector.load %arg1[%c1, %c0_2, %c0_3] : memref<2x8x256xf32, #tpu.memory_space<vmem>>, vector<1x8x256xf32>
    %3 = vector.shape_cast %2 : vector<1x8x256xf32> to vector<8x256xf32>
    %4 = tpu.concatenate %1, %3 in 1 : vector<8x256xf32>, vector<8x256xf32> -> vector<8x512xf32>
    %c17_i32 = arith.constant 17 : i32
    %5 = tpu.dynamic_rotate %4 by %c17_i32 dim 1 : vector<8x512xf32>, i32 -> vector<8x512xf32>
    %c0_4 = arith.constant 0 : index
    %c0_5 = arith.constant 0 : index
    %6 = vector.load %arg4[%c0_4, %c0_5] : memref<9x512xf32, #tpu.memory_space<vmem>>, vector<1x512xf32>
    %7 = vector.broadcast %6 : vector<1x512xf32> to vector<8x512xf32>
    %8 = arith.mulf %5, %7 : vector<8x512xf32>
    %c16_i32 = arith.constant 16 : i32
    %9 = tpu.dynamic_rotate %4 by %c16_i32 dim 1 : vector<8x512xf32>, i32 -> vector<8x512xf32>
    %c1_6 = arith.constant 1 : index
    %c0_7 = arith.constant 0 : index
    %10 = vector.load %arg4[%c1_6, %c0_7] : memref<9x512xf32, #tpu.memory_space<vmem>>, vector<1x512xf32>
    %11 = vector.broadcast %10 : vector<1x512xf32> to vector<8x512xf32>
    %12 = arith.mulf %9, %11 : vector<8x512xf32>
    %c15_i32 = arith.constant 15 : i32
    %13 = tpu.dynamic_rotate %4 by %c15_i32 dim 1 : vector<8x512xf32>, i32 -> vector<8x512xf32>
    %c2 = arith.constant 2 : index
    %c0_8 = arith.constant 0 : index
    %14 = vector.load %arg4[%c2, %c0_8] : memref<9x512xf32, #tpu.memory_space<vmem>>, vector<1x512xf32>
    %15 = vector.broadcast %14 : vector<1x512xf32> to vector<8x512xf32>
    %16 = arith.mulf %13, %15 : vector<8x512xf32>
    %c1_i32 = arith.constant 1 : i32
    %17 = tpu.dynamic_rotate %4 by %c1_i32 dim 1 : vector<8x512xf32>, i32 -> vector<8x512xf32>
    %c3 = arith.constant 3 : index
    %c0_9 = arith.constant 0 : index
    %18 = vector.load %arg4[%c3, %c0_9] : memref<9x512xf32, #tpu.memory_space<vmem>>, vector<1x512xf32>
    %19 = vector.broadcast %18 : vector<1x512xf32> to vector<8x512xf32>
    %20 = arith.mulf %17, %19 : vector<8x512xf32>
    %c511_i32 = arith.constant 511 : i32
    %21 = tpu.dynamic_rotate %4 by %c511_i32 dim 1 : vector<8x512xf32>, i32 -> vector<8x512xf32>
    %c5 = arith.constant 5 : index
    %c0_10 = arith.constant 0 : index
    %22 = vector.load %arg4[%c5, %c0_10] : memref<9x512xf32, #tpu.memory_space<vmem>>, vector<1x512xf32>
    %23 = vector.broadcast %22 : vector<1x512xf32> to vector<8x512xf32>
    %24 = arith.mulf %21, %23 : vector<8x512xf32>
    %c497_i32 = arith.constant 497 : i32
    %25 = tpu.dynamic_rotate %4 by %c497_i32 dim 1 : vector<8x512xf32>, i32 -> vector<8x512xf32>
    %c6 = arith.constant 6 : index
    %c0_11 = arith.constant 0 : index
    %26 = vector.load %arg4[%c6, %c0_11] : memref<9x512xf32, #tpu.memory_space<vmem>>, vector<1x512xf32>
    %27 = vector.broadcast %26 : vector<1x512xf32> to vector<8x512xf32>
    %28 = arith.mulf %25, %27 : vector<8x512xf32>
    %c496_i32 = arith.constant 496 : i32
    %29 = tpu.dynamic_rotate %4 by %c496_i32 dim 1 : vector<8x512xf32>, i32 -> vector<8x512xf32>
    %c7 = arith.constant 7 : index
    %c0_12 = arith.constant 0 : index
    %30 = vector.load %arg4[%c7, %c0_12] : memref<9x512xf32, #tpu.memory_space<vmem>>, vector<1x512xf32>
    %31 = vector.broadcast %30 : vector<1x512xf32> to vector<8x512xf32>
    %32 = arith.mulf %29, %31 : vector<8x512xf32>
    %c495_i32 = arith.constant 495 : i32
    %33 = tpu.dynamic_rotate %4 by %c495_i32 dim 1 : vector<8x512xf32>, i32 -> vector<8x512xf32>
    %c8 = arith.constant 8 : index
    %c0_13 = arith.constant 0 : index
    %34 = vector.load %arg4[%c8, %c0_13] : memref<9x512xf32, #tpu.memory_space<vmem>>, vector<1x512xf32>
    %35 = vector.broadcast %34 : vector<1x512xf32> to vector<8x512xf32>
    %36 = arith.mulf %33, %35 : vector<8x512xf32>
    %37 = tpu.concatenate %8, %12, %16, %20, %4, %24, %28, %32, %36 in 0 : vector<8x512xf32>, vector<8x512xf32>, vector<8x512xf32>, vector<8x512xf32>, vector<8x512xf32>, vector<8x512xf32>, vector<8x512xf32>, vector<8x512xf32>, vector<8x512xf32> -> vector<72x512xf32>
    %c0_14 = arith.constant 0 : index
    %c0_15 = arith.constant 0 : index
    %38 = vector.load %arg2[%c0_14, %c0_15] : memref<8x72xf32, #tpu.memory_space<vmem>>, vector<8x72xf32>
    %cst = arith.constant dense<0.000000e+00> : vector<8x512xf32>
    %39 = tpu.matmul %38, %37, %cst {dimension_numbers = #tpu.dot_dimension_numbers<[1], [0], [0], [1], [0, 0, 1, 1], [], []>} : vector<8x72xf32>, vector<72x512xf32>, vector<8x512xf32> -> vector<8x512xf32>
    %c0_16 = arith.constant 0 : index
    %c0_17 = arith.constant 0 : index
    %40 = vector.load %arg3[%c0_16, %c0_17] : memref<8x1xf32, #tpu.memory_space<vmem>>, vector<8x1xf32>
    %41 = vector.broadcast %40 : vector<8x1xf32> to vector<8x512xf32>
    %42 = arith.addf %39, %41 : vector<8x512xf32>
    %cst_18 = arith.constant 0.000000e+00 : f32
    %43 = vector.broadcast %cst_18 : f32 to vector<8x512xf32>
    %44 = arith.maximumf %42, %43 : vector<8x512xf32>
    %45 = vector.extract_strided_slice %44 {offsets = [0, 0], sizes = [8, 256], strides = [1, 1]} : vector<8x512xf32> to vector<8x256xf32>
    %c0_19 = arith.constant 0 : index
    %c0_20 = arith.constant 0 : index
    %c0_21 = arith.constant 0 : index
    %46 = vector.load %arg5[%c0_19, %c0_20, %c0_21] : memref<2x8x256xf32, #tpu.memory_space<vmem>>, vector<1x8x256xf32>
    %47 = vector.shape_cast %46 : vector<1x8x256xf32> to vector<8x256xf32>
    %48 = vector.shape_cast %45 : vector<8x256xf32> to vector<1x8x256xf32>
    tpu.vector_store %arg5[%c0_19, %c0_20, %c0_21], %48 {strides = array<i32>} : memref<2x8x256xf32, #tpu.memory_space<vmem>>, vector<1x8x256xf32>,
    %49 = vector.extract_strided_slice %44 {offsets = [0, 256], sizes = [8, 256], strides = [1, 1]} : vector<8x512xf32> to vector<8x256xf32>
    %c1_22 = arith.constant 1 : index
    %c0_23 = arith.constant 0 : index
    %c0_24 = arith.constant 0 : index
    %50 = vector.load %arg5[%c1_22, %c0_23, %c0_24] : memref<2x8x256xf32, #tpu.memory_space<vmem>>, vector<1x8x256xf32>
    %51 = vector.shape_cast %50 : vector<1x8x256xf32> to vector<8x256xf32>
    %52 = vector.shape_cast %49 : vector<8x256xf32> to vector<1x8x256xf32>
    tpu.vector_store %arg5[%c1_22, %c0_23, %c0_24], %52 {strides = array<i32>} : memref<2x8x256xf32, #tpu.memory_space<vmem>>, vector<1x8x256xf32>,
    return
  }
  func.func @transform_0(%arg0: i32) -> (i32, i32, i32) {
    %c0_i32 = arith.constant 0 : i32
    %c0_i32_0 = arith.constant 0 : i32
    %c0_i32_1 = arith.constant 0 : i32
    return %arg0, %c0_i32, %c0_i32_0 : i32, i32, i32
  }
  func.func @transform_1(%arg0: i32) -> (i32, i32) {
    %c0_i32 = arith.constant 0 : i32
    %c0_i32_0 = arith.constant 0 : i32
    %c0_i32_1 = arith.constant 0 : i32
    return %c0_i32, %c0_i32_0 : i32, i32
  }
  func.func @transform_2(%arg0: i32) -> (i32, i32) {
    %c0_i32 = arith.constant 0 : i32
    %c0_i32_0 = arith.constant 0 : i32
    %c0_i32_1 = arith.constant 0 : i32
    return %c0_i32, %c0_i32_0 : i32, i32
  }
  func.func @transform_3(%arg0: i32) -> (i32, i32) {
    %c0_i32 = arith.constant 0 : i32
    %c0_i32_0 = arith.constant 0 : i32
    %c0_i32_1 = arith.constant 0 : i32
    return %c0_i32, %c0_i32_0 : i32, i32
  }
  func.func @transform_4(%arg0: i32) -> (i32, i32, i32) {
    %c0_i32 = arith.constant 0 : i32
    %c0_i32_0 = arith.constant 0 : i32
    %c0_i32_1 = arith.constant 0 : i32
    return %arg0, %c0_i32, %c0_i32_0 : i32, i32, i32
  }
}

</mosaic_0001>

<bundles_post_ra>
// kernel: conv_relu.1
= control target key start
LH: loop header
LB: loop body
LE: loop exit
PB: predicated region body
PF: predicated region fallthrough
CT: control target
= control target key end

     0   :  { %s565_s19 = smov 17   ;;  %s566_s24 = smov 16   ;;  %v572_v4 = vmov 0.0   ;;  %v573_v5 = vmov 0   ;;  %v30_v7 = vlaneseq  ;;  %vm350_vm8 = vcmask 588800   ;;  %s804_s0 = inlined_call_operand.vmem [shape: f32[2,8,256], index: 0, kind: input, shape index: {}]   ;;  %s805_s2 = inlined_call_operand.vmem [shape: f32[8,1], index: 2, kind: input, shape index: {}]   ;;  %s806_s3 = inlined_call_operand.vmem [shape: f32[9,512], index: 3, kind: input, shape index: {}]   ;;  %s807_s1 = inlined_call_operand.vmem [shape: f32[8,72], index: 1, kind: input, shape index: {}]   ;;  %s808_s4 = inlined_call_operand.vmem [shape: f32[2,8,256], index: 4, kind: output, shape index: {}]  }
   0x1   :  { %v603_v0 = vld [vmem:[%s804_s0 + $0x10] sm:$0xff]  ;;  %v608_v1 = vld [vmem:[%s804_s0] sm:$0xff]  ;;  %v615_v2 = vld [vmem:[%s804_s0 + $0x18] sm:$0xff]  ;;  %s567_s25 = smov 15   ;;  %s569_s26 = smov 127   ;;  %418 = vmatprep.mubr.f32.mxu0 %v572_v4  ;;  %489 = vmatprep.mubr.f32.mxu1 %v572_v4 }
   0x2   :  { %26 = vrot.lane.b32.xlu1 %v603_v0, %s565_s19  ;;  %22 = vrot.lane.b32.xlu0 %v608_v1, %s565_s19  ;;  %v620_v3 = vld [vmem:[%s804_s0 + $0x8] sm:$0xff]  ;;  %s568_s0 = smov 1   ;;  %s570_s27 = smov 113   ;;  %v344_v6 = vld [vmem:[%s805_s2] sm:$0xff]  ;;  %v40_v8 = vshrl.u32 %v30_v7, 7  ;;  %v655_v11 = vand.u32 127, %v30_v7 }
   0x3   :  { %s571_s28 = smov 112   ;;  %564 = vset.pattern.permute.xlu0 %v573_v5  ;;  %s574_s29 = smov 111   ;;  %v37_v13 = vld [vmem:[%s806_s3] ss:$8 sm:$0xf] }
   0x4   :  { %v657_v12 = vsub.s32 1, %v40_v8  ;;  %v511_v14 = vld [vmem:[%s806_s3 + $0x1] ss:$8 sm:$0xf]  ;;  %vm32_vm0 = vcmp.lt.s32.totalorder %v655_v11, 17  ;;  %v666_v15 = vsub.s32 0, %v40_v8 }
   0x5   :  { %v668_v17 = vsub.s32 2, %v40_v8  ;;  %v670_v19 = vsub.s32 3, %v40_v8  ;;  %vm71_vm1 = vcmp.lt.s32.totalorder %v655_v11, 16  ;;  %v512_v54 = vld [vmem:[%s806_s3 + $0x2] ss:$8 sm:$0xf] }
   0x6   :  { %28 = vrot.lane.b32.xlu1 %v615_v2, %s565_s19  ;;  %24 = vrot.lane.b32.xlu0 %v620_v3, %s565_s19  ;;  %v46_v20 = vrot.slane %v37_v13, %v657_v12  ;;  %v86_v21 = vrot.slane %v511_v14, %v657_v12  ;;  %v42_v23 = vrot.slane %v37_v13, %v666_v15  ;;  %v513_v55 = vld [vmem:[%s806_s3 + $0x3] ss:$8 sm:$0xf]  ;;  %vm111_vm2 = vcmp.lt.s32.totalorder %v655_v11, 15 }
   0x7   :  { %v50_v24 = vrot.slane %v37_v13, %v668_v17  ;;  %v82_v27 = vrot.slane %v511_v14, %v666_v15  ;;  %v90_v30 = vrot.slane %v511_v14, %v668_v17  ;;  %v54_v31 = vrot.slane %v37_v13, %v670_v19 }
   0x8   :  { %v94_v35 = vrot.slane %v511_v14, %v670_v19  ;;  %v126_v58 = vrot.slane %v512_v54, %v657_v12  ;;  %vm151_vm3 = vcmp.lt.s32.totalorder %v655_v11, 1  ;;  %v166_v59 = vrot.slane %v513_v55, %v657_v12 }
   0x9   :  { %v122_v61 = vrot.slane %v512_v54, %v666_v15  ;;  %v130_v62 = vrot.slane %v512_v54, %v668_v17  ;;  %v134_v63 = vrot.slane %v512_v54, %v670_v19  ;;  %v162_v8 = vrot.slane %v513_v55, %v666_v15 }
   0xa   :  { %65 = vrot.lane.b32.xlu1 %v620_v3, %s566_s24  ;;  %63 = vrot.lane.b32.xlu0 %v608_v1, %s566_s24  ;;  %vm191_vm4 = vcmp.lt.s32.totalorder %v655_v11, 127  ;;  %vm271_vm5 = vcmp.lt.s32.totalorder %v655_v11, 112  ;;  %vm231_vm6 = vcmp.lt.s32.totalorder %v655_v11, 113  ;;  %vm311_vm7 = vcmp.lt.s32.totalorder %v655_v11, 111 }
   0xe   :  { %69 = vrot.lane.b32.xlu1 %v615_v2, %s566_s24  ;;  %67 = vrot.lane.b32.xlu0 %v603_v0, %s566_s24 }
  0x12   :  { %105 = vrot.lane.b32.xlu1 %v620_v3, %s567_s25  ;;  %103 = vrot.lane.b32.xlu0 %v608_v1, %s567_s25 }
  0x16   :  { %109 = vrot.lane.b32.xlu1 %v615_v2, %s567_s25  ;;  %107 = vrot.lane.b32.xlu0 %v603_v0, %s567_s25 }
  0x1a   :  { %145 = vrot.lane.b32.xlu1 %v620_v3, %s568_s0  ;;  %143 = vrot.lane.b32.xlu0 %v608_v1, %s568_s0 }
  0x1e   :  { %149 = vrot.lane.b32.xlu1 %v615_v2, %s568_s0  ;;  %147 = vrot.lane.b32.xlu0 %v603_v0, %s568_s0 }
  0x22   :  { %185 = vrot.lane.b32.xlu1 %v620_v3, %s569_s26  ;;  %183 = vrot.lane.b32.xlu0 %v608_v1, %s569_s26 }
  0x26   :  { %189 = vrot.lane.b32.xlu1 %v615_v2, %s569_s26  ;;  %187 = vrot.lane.b32.xlu0 %v603_v0, %s569_s26 }
  0x2a   :  { %225 = vrot.lane.b32.xlu1 %v620_v3, %s570_s27  ;;  %223 = vrot.lane.b32.xlu0 %v608_v1, %s570_s27 }
  0x2e   :  { %229 = vrot.lane.b32.xlu1 %v615_v2, %s570_s27  ;;  %227 = vrot.lane.b32.xlu0 %v603_v0, %s570_s27 }
  0x32   :  { %265 = vrot.lane.b32.xlu1 %v620_v3, %s571_s28  ;;  %263 = vrot.lane.b32.xlu0 %v608_v1, %s571_s28 }
  0x36   :  { %269 = vrot.lane.b32.xlu1 %v615_v2, %s571_s28  ;;  %267 = vrot.lane.b32.xlu0 %v603_v0, %s571_s28 }
  0x3a   :  { %305 = vrot.lane.b32.xlu1 %v620_v3, %s574_s29  ;;  %303 = vrot.lane.b32.xlu0 %v608_v1, %s574_s29 }
  0x3e   :  { %309 = vrot.lane.b32.xlu1 %v615_v2, %s574_s29  ;;  %307 = vrot.lane.b32.xlu0 %v603_v0, %s574_s29 }
  0x42   :  { %347 = vperm.xlu0 %564, %v344_v6  }
  0x74   :  { %v27_v9 = vpop.permute.xlu1 %26  ;;  %v23_v10 = vpop.permute.xlu0 %22 }
  0x78   :  { %v29_v16 = vpop.permute.xlu1 %28  ;;  %v25_v18 = vpop.permute.xlu0 %24 }
  0x79   :  { %v35_v22 = vsel %vm32_vm0, %v23_v10, %v25_v18  ;;  %v36_v28 = vsel %vm32_vm0, %v29_v16, %v23_v10  ;;  %v34_v32 = vsel %vm32_vm0, %v25_v18, %v27_v9  ;;  %v33_v36 = vsel %vm32_vm0, %v27_v9, %v29_v16 }
  0x7a   :  { %v60_v33 = vmul.f32 %v46_v20, %v35_v22  ;;  %v59_v37 = vmul.f32 %v42_v23, %v36_v28  ;;  %v61_v41 = vmul.f32 %v50_v24, %v34_v32  ;;  %v62_v47 = vmul.f32 %v54_v31, %v33_v36  ;;  %v514_v32 = vld [vmem:[%s806_s3 + $0x5] ss:$8 sm:$0xf] }
  0x7b   :  { %v170_v9 = vrot.slane %v513_v55, %v668_v17  ;;  %v174_v16 = vrot.slane %v513_v55, %v670_v19 }
  0x7c   :  { %v66_v25 = vpop.permute.xlu1 %65  ;;  %v64_v26 = vpop.permute.xlu0 %63 }
  0x7d   :  { %v74_v29 = vsel %vm71_vm1, %v64_v26, %v66_v25 }
  0x7e   :  { %v100_v34 = vmul.f32 %v86_v21, %v74_v29 }
  0x80   :  { %v70_v38 = vpop.permute.xlu1 %69  ;;  %v68_v39 = vpop.permute.xlu0 %67  ;;  %v522_v40 = vpack.c.bf16 %v100_v34, %v60_v33 }
  0x81   :  { %v75_v42 = vsel %vm71_vm1, %v70_v38, %v64_v26  ;;  %v72_v43 = vsel %vm71_vm1, %v68_v39, %v70_v38  ;;  %v73_v44 = vsel %vm71_vm1, %v66_v25, %v68_v39  ;;  %v202_v38 = vrot.slane %v514_v32, %v666_v15 }
  0x82   :  { %v99_v45 = vmul.f32 %v82_v27, %v75_v42  ;;  %v101_v46 = vmul.f32 %v90_v30, %v73_v44  ;;  %523 = vmatprep.subr.bf16.mxu0 %v522_v40  ;;  %v102_v48 = vmul.f32 %v94_v35, %v72_v43  ;;  %v214_v39 = vrot.slane %v514_v32, %v670_v19 }
  0x83   :  { %v210_v42 = vrot.slane %v514_v32, %v668_v17 }
  0x84   :  { %v106_v49 = vpop.permute.xlu1 %105  ;;  %v104_v50 = vpop.permute.xlu0 %103  ;;  %v524_v51 = vpack.c.bf16 %v99_v45, %v59_v37  ;;  %v538_v52 = vpack.c.bf16 %v102_v48, %v62_v47  ;;  %v540_v53 = vpack.c.bf16 %v101_v46, %v61_v41  ;;  %v206_v41 = vrot.slane %v514_v32, %v657_v12  ;;  %v517_v32 = vld [vmem:[%s806_s3 + $0x20] ss:$8 sm:$0xf] }
  0x85   :  { %v114_v60 = vsel %vm111_vm2, %v104_v50, %v106_v49 }
  0x86   :  { %525 = vmatpush1.bf16.msra.mxu0 %v524_v51  ;;  %539 = vmatprep.subr.bf16.mxu1 %v538_v52  ;;  %v140_v10 = vmul.f32 %v126_v58, %v114_v60  ;;  %v516_v60 = vld [vmem:[%s806_s3 + $0x7] ss:$8 sm:$0xf] }
  0x87   :  { %541 = vmatpush1.bf16.msra.mxu1 %v540_v53 }
  0x88   :  { %v110_v56 = vpop.permute.xlu1 %109  ;;  %v108_v57 = vpop.permute.xlu0 %107 }
  0x89   :  { %v115_v6 = vsel %vm111_vm2, %v110_v56, %v104_v50  ;;  %v113_v13 = vsel %vm111_vm2, %v106_v49, %v108_v57  ;;  %v112_v18 = vsel %vm111_vm2, %v108_v57, %v110_v56 }
  0x8a   :  { %v139_v20 = vmul.f32 %v122_v61, %v115_v6  ;;  %v141_v24 = vmul.f32 %v130_v62, %v113_v13  ;;  %v142_v28 = vmul.f32 %v134_v63, %v112_v18 }
  0x8c   :  { %v146_v4 = vpop.permute.xlu1 %145  ;;  %v144_v5 = vpop.permute.xlu0 %143 }
  0x8d   :  { %v154_v7 = vsel %vm151_vm3, %v144_v5, %v146_v4 }
  0x8e   :  { %v180_v14 = vmul.f32 %v166_v59, %v154_v7  ;;  %v294_v7 = vrot.slane %v516_v60, %v670_v19 }
  0x90   :  { %v150_v21 = vpop.permute.xlu1 %149  ;;  %v148_v22 = vpop.permute.xlu0 %147  ;;  %v526_v23 = vpack.c.bf16 %v180_v14, %v140_v10 }
  0x91   :  { %v155_v25 = vsel %vm151_vm3, %v150_v21, %v144_v5  ;;  %v152_v26 = vsel %vm151_vm3, %v148_v22, %v150_v21  ;;  %v153_v27 = vsel %vm151_vm3, %v146_v4, %v148_v22  ;;  %v282_v5 = vrot.slane %v516_v60, %v666_v15 }
  0x92   :  { %v179_v29 = vmul.f32 %v162_v8, %v155_v25  ;;  %v181_v30 = vmul.f32 %v170_v9, %v153_v27  ;;  %v182_v31 = vmul.f32 %v174_v16, %v152_v26  ;;  %527 = vmatprep.subr.bf16.mxu0 %v526_v23  ;;  %v286_v8 = vrot.slane %v516_v60, %v657_v12 }
  0x93   :  { %v290_v9 = vrot.slane %v516_v60, %v668_v17 }
  0x94   :  { %v186_v33 = vpop.permute.xlu1 %185  ;;  %v184_v34 = vpop.permute.xlu0 %183  ;;  %v528_v35 = vpack.c.bf16 %v179_v29, %v139_v20  ;;  %v542_v36 = vpack.c.bf16 %v182_v31, %v142_v28  ;;  %v544_v37 = vpack.c.bf16 %v181_v30, %v141_v24 }
  0x95   :  { %v194_v40 = vsel %vm191_vm4, %v184_v34, %v186_v33 }
  0x96   :  { %529 = vmatpush1.bf16.msra.mxu0 %v528_v35  ;;  %543 = vmatprep.subr.bf16.mxu1 %v542_v36  ;;  %v219_v45 = vmul.f32 %v202_v38, %v194_v40  ;;  %v334_v38 = vrot.slane %v517_v32, %v670_v19  ;;  %v330_v40 = vrot.slane %v517_v32, %v668_v17 }
  0x97   :  { %545 = vmatpush1.bf16.msra.mxu1 %v544_v37 }
  0x98   :  { %v190_v43 = vpop.permute.xlu1 %189  ;;  %v188_v44 = vpop.permute.xlu0 %187  ;;  %v532_v57 = vpack.c.bf16 %v219_v45, %v608_v1 }
  0x99   :  { %v195_v46 = vsel %vm191_vm4, %v190_v43, %v184_v34  ;;  %v192_v47 = vsel %vm191_vm4, %v188_v44, %v190_v43  ;;  %v193_v48 = vsel %vm191_vm4, %v186_v33, %v188_v44 }
  0x9a   :  { %v222_v49 = vmul.f32 %v214_v39, %v195_v46  ;;  %v220_v50 = vmul.f32 %v206_v41, %v193_v48  ;;  %v221_v51 = vmul.f32 %v210_v42, %v192_v47  ;;  %v326_v39 = vrot.slane %v517_v32, %v657_v12  ;;  %v343_v48 = vld [vmem:[%s807_s1] sm:$0xff] }
  0x9b   :  { %v322_v41 = vrot.slane %v517_v32, %v666_v15 }
  0x9c   :  { %v226_v52 = vpop.permute.xlu1 %225  ;;  %v224_v53 = vpop.permute.xlu0 %223  ;;  %v530_v54 = vpack.c.bf16 %v220_v50, %v620_v3  ;;  %v546_v55 = vpack.c.bf16 %v222_v49, %v615_v2  ;;  %v548_v56 = vpack.c.bf16 %v221_v51, %v603_v0  ;;  %v515_v3 = vld [vmem:[%s806_s3 + $0x6] ss:$8 sm:$0xf] }
  0x9d   :  { %v254_v0 = vrot.slane %v515_v3, %v670_v19  ;;  %v246_v1 = vrot.slane %v515_v3, %v657_v12  ;;  %v250_v63 = vrot.slane %v515_v3, %v668_v17  ;;  %v242_v10 = vrot.slane %v515_v3, %v666_v15 }
  0x9e   :  { %531 = vmatprep.subr.bf16.mxu0 %v530_v54  ;;  %547 = vmatprep.subr.bf16.mxu1 %v546_v55  ;;  %v234_v14 = vsel %vm231_vm6, %v224_v53, %v226_v52 }
  0x9f   :  { %533 = vmatpush1.bf16.msra.mxu0 %v532_v57  ;;  %549 = vmatpush1.bf16.msra.mxu1 %v548_v56  ;;  %v259_v30 = vmul.f32 %v242_v10, %v234_v14 }
  0xa0   :  { %v230_v58 = vpop.permute.xlu1 %229  ;;  %v228_v59 = vpop.permute.xlu0 %227 }
  0xa1   :  { %v235_v62 = vsel %vm231_vm6, %v230_v58, %v224_v53  ;;  %v233_v4 = vsel %vm231_vm6, %v226_v52, %v228_v59  ;;  %v232_v13 = vsel %vm231_vm6, %v228_v59, %v230_v58 }
  0xa2   :  { %v262_v16 = vmul.f32 %v254_v0, %v235_v62  ;;  %v260_v18 = vmul.f32 %v246_v1, %v233_v4  ;;  %v261_v26 = vmul.f32 %v250_v63, %v232_v13 }
  0xa4   :  { %v266_v2 = vpop.permute.xlu1 %265  ;;  %v264_v61 = vpop.permute.xlu0 %263 }
  0xa5   :  { %v274_v6 = vsel %vm271_vm5, %v264_v61, %v266_v2 }
  0xa6   :  { %v299_v22 = vmul.f32 %v282_v5, %v274_v6 }
  0xa8   :  { %v270_v20 = vpop.permute.xlu1 %269  ;;  %v268_v21 = vpop.permute.xlu0 %267  ;;  %v536_v37 = vpack.c.bf16 %v299_v22, %v259_v30 }
  0xa9   :  { %v275_v23 = vsel %vm271_vm5, %v270_v20, %v264_v61  ;;  %v272_v24 = vsel %vm271_vm5, %v268_v21, %v270_v20  ;;  %v273_v25 = vsel %vm271_vm5, %v266_v2, %v268_v21 }
  0xaa   :  { %v302_v27 = vmul.f32 %v294_v7, %v275_v23  ;;  %v300_v28 = vmul.f32 %v286_v8, %v273_v25  ;;  %v301_v29 = vmul.f32 %v290_v9, %v272_v24 }
  0xac   :  { %v306_v31 = vpop.permute.xlu1 %305  ;;  %v304_v33 = vpop.permute.xlu0 %303  ;;  %v534_v34 = vpack.c.bf16 %v300_v28, %v260_v18  ;;  %v550_v35 = vpack.c.bf16 %v302_v27, %v262_v16  ;;  %v552_v36 = vpack.c.bf16 %v301_v29, %v261_v26 }
  0xad   :  { %v314_v42 = vsel %vm311_vm7, %v304_v33, %v306_v31 }
  0xae   :  { %535 = vmatprep.subr.bf16.mxu0 %v534_v34  ;;  %551 = vmatprep.subr.bf16.mxu1 %v550_v35  ;;  %v339_v15 = vmul.f32 %v322_v41, %v314_v42 }
  0xaf   :  { %537 = vmatpush1.bf16.msra.mxu0 %v536_v37  ;;  %553 = vmatpush1.bf16.msra.mxu1 %v552_v36 }
  0xb0   :  { %v310_v43 = vpop.permute.xlu1 %309  ;;  %v308_v44 = vpop.permute.xlu0 %307 }
  0xb1   :  { %v315_v45 = vsel %vm311_vm7, %v310_v43, %v304_v33  ;;  %v312_v46 = vsel %vm311_vm7, %v308_v44, %v310_v43  ;;  %v313_v12 = vsel %vm311_vm7, %v306_v31, %v308_v44 }
  0xb2   :  { %v342_v19 = vmul.f32 %v334_v38, %v315_v45  ;;  %v340_v17 = vmul.f32 %v326_v39, %v313_v12  ;;  %v341_v47 = vmul.f32 %v330_v40, %v312_v46 }
  0xb4   :  { %370 = vmatprep.subr.mxu0 %v340_v17  ;;  %441 = vmatprep.subr.mxu1 %v342_v19 }
  0xb5   :  { %371 = vmatpush1.msra.mxu0 %v339_v15  ;;  %442 = vmatpush1.msra.mxu1 %v341_v47 }
  0xb6   :  { %518 = vmatmul.mubr.msk.f32.vlgmr.msra.gmra.mrb[0].mxu0 %vm350_vm8, %v343_v48  ;;  %519 = vmatmul.mubr.msk.f32.vlgmr.msra.gmra.mrb[0].mxu1 %vm350_vm8, %v343_v48 }
  0xc1   :  { %v348_v49 = vpop.permute.xlu0 %347 }
 0x189   :  { %v420_v50 = vpop.f32.mrb[0].mxu0  ;;  %v491_v51 = vpop.f32.mrb[0].mxu1 }
 0x18a   :  { %v421_v11 = vadd.f32 %v420_v50, %v348_v49  ;;  %v492_v52 = vadd.f32 %v491_v51, %v348_v49  ;;  %v422_v53 = vpop.f32.mrb[1].mxu0  ;;  %v493_v54 = vpop.f32.mrb[1].mxu1 }
 0x18b   :  { %v423_v55 = vadd.f32 %v422_v53, %v348_v49  ;;  %v494_v56 = vadd.f32 %v493_v54, %v348_v49 }
 0x18c   :  { %v496_v57 = vmax.f32 %v421_v11, 0.0  ;;  %v498_v58 = vmax.f32 %v492_v52, 0.0 }
 0x18d   :  { %v497_v59 = vmax.f32 %v423_v55, 0.0  ;;  %v499_v60 = vmax.f32 %v494_v56, 0.0 }
 0x18e   :  { %500 = vst [vmem:[%s808_s4] sm:$0xff] %v496_v57  ;;  %520 = vst [vmem:[%s808_s4 + $0x10] sm:$0xff] %v498_v58 }
 0x18f   :  { %501 = vst [vmem:[%s808_s4 + $0x8] sm:$0xff] %v497_v59  ;;  %521 = vst [vmem:[%s808_s4 + $0x18] sm:$0xff] %v499_v60 }

</bundles_post_ra>
